<compile_context>
chip_gen: v7x
topology: tpu7x:2x2x1
jax: 0.10.0
libtpu: 0.0.40
codegen_flags: <defaults>
</compile_context>

<pallas_src>
import functools

import jax
import jax.numpy as jnp
from jax.experimental import pallas as pl
from jax.experimental.pallas import tpu as pltpu


# ---------------------------------------------------------------------------
# Shared cSE FC chain (always f32: pool/FC/sigmoid are the numerically sensitive part)
# ---------------------------------------------------------------------------
def _cse_gate(pooled_f32, w1_ref, b1_ref, w2_ref, b2_ref):
    h = jnp.maximum(
        jnp.dot(pooled_f32, w1_ref[...], preferred_element_type=jnp.float32) + b1_ref[...],
        0.0,
    )
    return jax.nn.sigmoid(
        jnp.dot(h, w2_ref[...], preferred_element_type=jnp.float32) + b2_ref[...]
    )


# ---------------------------------------------------------------------------
# Path A: fused single-pass kernel (whole (C, HW) plane per block)
# ---------------------------------------------------------------------------
def scse_fused_kernel(x_ref, w1_ref, b1_ref, w2_ref, b2_ref, ws_ref, bs_ref, o_ref):
    xv = x_ref[...]                                               # (B, C, HW), input dtype

    # cSE: global avg pool (lane reduce, f32 accumulate) -> FC -> ReLU -> FC -> sigmoid
    pooled = jnp.mean(xv, axis=2, dtype=jnp.float32)              # (B, C) f32
    cgate = _cse_gate(pooled, w1_ref, b1_ref, w2_ref, b2_ref)     # (B, C) f32

    # sSE: 1x1 conv C->1 as VPU multiply + sublane reduce (f32 accumulate)
    ws = ws_ref[...].astype(xv.dtype)[None, :, :]                 # (1, C, 1)
    slogit = jnp.sum(xv * ws, axis=1, keepdims=True, dtype=jnp.float32) + bs_ref[0]
    sgate = jax.nn.sigmoid(slogit)                                # (B, 1, HW) f32

    # Fused combine in the streaming (input) dtype: out = x * (cgate + sgate)
    gate = cgate.astype(xv.dtype)[:, :, None] + sgate.astype(xv.dtype)
    o_ref[...] = (xv * gate).astype(o_ref.dtype)


# ---------------------------------------------------------------------------
# Path B, kernel 1: pooled-mean / cgate pre-pass over an HW-tiled grid
# ---------------------------------------------------------------------------
def cse_pool_kernel(x_ref, w1_ref, b1_ref, w2_ref, b2_ref, cgate_ref, acc_ref, *, inv_hw):
    hid = pl.program_id(1)

    @pl.when(hid == 0)
    def _():
        acc_ref[...] = jnp.zeros_like(acc_ref)

    # Partial sum over this HW tile (f32 accumulation across tiles).
    acc_ref[...] += jnp.sum(x_ref[...], axis=2, dtype=jnp.float32)   # (1, C)

    @pl.when(hid == pl.num_programs(1) - 1)
    def _():
        pooled = acc_ref[...] * inv_hw                               # (1, C)
        cg = _cse_gate(pooled, w1_ref, b1_ref, w2_ref, b2_ref)       # (1, C)
        cgate_ref[...] = cg[:, None, :]                              # (1, 1, C)


# ---------------------------------------------------------------------------
# Path B, kernel 2: streaming gate application over (batch, HW-tile) grid
# ---------------------------------------------------------------------------
def scse_apply_kernel(cgate_ref, x_ref, ws_ref, bs_ref, o_ref):
    xv = x_ref[...]                                                  # (1, C, hw_t)
    cg = cgate_ref[...][:, 0, :]                                     # (1, C) f32

    ws = ws_ref[...].astype(xv.dtype)[None, :, :]                    # (1, C, 1)
    slogit = jnp.sum(xv * ws, axis=1, keepdims=True, dtype=jnp.float32) + bs_ref[0]
    sgate = jax.nn.sigmoid(slogit)                                   # (1, 1, hw_t) f32

    gate = cg.astype(xv.dtype)[:, :, None] + sgate.astype(xv.dtype)  # (1, C, hw_t)
    o_ref[...] = (xv * gate).astype(o_ref.dtype)


# ---------------------------------------------------------------------------
# Sizing helpers (generation aware)
# ---------------------------------------------------------------------------
def _vmem_budgets():
    """Return (vmem_limit_bytes, target_input_block_bytes) based on the chip's VMEM."""
    phys = 128 * 1024 * 1024  # conservative default (v5e/v6e)
    try:
        info = pltpu.get_tpu_info()
        phys = int(getattr(info, "vmem_capacity_bytes", phys))
    except Exception:
        pass
    # Leave headroom below physical VMEM; budget 2x-in + 2x-out double buffers
    # plus ~3 block-sized temps (~7-8 blocks) under that scoped limit.
    vmem_limit = min(int(phys * 0.6), 100 * 1024 * 1024)
    target_block = max(1 << 20, min(vmem_limit // 10, 8 << 20))
    return vmem_limit, target_block


def _pick_block_batch(n, per_batch_bytes, target_block_bytes,
                      min_steps=8, min_block_bytes=256 * 1024):
    """Batch elements per grid step: as fat as the VMEM budget allows, but prefer
    >= min_steps grid steps (pipeline overlap / megacore balance) while blocks stay
    above min_block_bytes; always keep >= 2 steps when n >= 2."""
    bb = max(1, min(n, target_block_bytes // max(1, per_batch_bytes)))
    while bb > 1 and pl.cdiv(n, bb) < min_steps and (bb - 1) * per_batch_bytes >= min_block_bytes:
        bb -= 1
    while bb > 1 and pl.cdiv(n, bb) < 2:
        bb -= 1
    while n % bb != 0:           # avoid partially-populated blocks
        bb -= 1
    return bb


# ---------------------------------------------------------------------------
# Wrapper
# ---------------------------------------------------------------------------
def scse_block(x_nchw, params, *, block_batch=None, hw_tile=None):
    N, C, H, W = x_nchw.shape
    HW = H * W
    Cr = params["w1"].shape[1]

    x = x_nchw.reshape(N, C, HW)          # pure reshape, no extra HBM pass
    itemsize = x.dtype.itemsize
    vmem_limit, target_block = _vmem_budgets()
    plane_bytes = C * HW * itemsize

    if hw_tile is not None:
        if HW % hw_tile != 0 or (hw_tile != HW and hw_tile % 128 != 0):
            raise ValueError("hw_tile must divide H*W and be a multiple of 128 (or == H*W)")
        use_tiled = True
    else:
        use_tiled = plane_bytes > target_block and HW % 128 == 0
        # TODO(synk): when the plane doesn't fit and HW is not a 128-multiple (e.g. 7x7
        # heads), relayout to (B, HW, C) lane-dense blocks instead of this full-plane
        # fallback, so stores stay unmasked and VMEM stays bounded.

    if not use_tiled:
        # ---- Path A: fused single-pass kernel --------------------------------
        if block_batch is None:
            block_batch = _pick_block_batch(N, plane_bytes, target_block)
        grid = (N // block_batch,)

        out = pl.pallas_call(
            scse_fused_kernel,
            out_shape=jax.ShapeDtypeStruct((N, C, HW), x.dtype),
            grid_spec=pltpu.PrefetchScalarGridSpec(
                num_scalar_prefetch=0,
                grid=grid,
                in_specs=[
                    pl.BlockSpec((block_batch, C, HW), lambda n: (n, 0, 0)),  # x block
                    pl.BlockSpec((C, Cr), lambda n: (0, 0)),                  # w1
                    pl.BlockSpec((1, Cr), lambda n: (0, 0)),                  # b1
                    pl.BlockSpec((Cr, C), lambda n: (0, 0)),                  # w2
                    pl.BlockSpec((1, C), lambda n: (0, 0)),                   # b2
                    pl.BlockSpec((C, 1), lambda n: (0, 0)),                   # ws
                    pl.BlockSpec(memory_space=pltpu.MemorySpace.SMEM),        # bs scalar
                ],
                out_specs=pl.BlockSpec((block_batch, C, HW), lambda n: (n, 0, 0)),
            ),
            compiler_params=pltpu.CompilerParams(
                dimension_semantics=("parallel",),
                vmem_limit_bytes=vmem_limit,
            ),
        )(x, params["w1"], params["b1"], params["w2"], params["b2"],
          params["ws"], params["bs"])
        return out.reshape(N, C, H, W)

    # ---- Path B: HW-tiled two-pass (pre-pass cgate, then streaming apply) ----
    if hw_tile is None:
        cands = [t for t in range(128, HW + 1, 128)
                 if HW % t == 0 and C * t * itemsize <= target_block]
        hw_tile = max(cands) if cands else 128
    n_hw = HW // hw_tile

    pool_kernel = functools.partial(cse_pool_kernel, inv_hw=1.0 / float(HW))
    cgate = pl.pallas_call(
        pool_kernel,
        out_shape=jax.ShapeDtypeStruct((N, 1, C), jnp.float32),
        grid_spec=pltpu.PrefetchScalarGridSpec(
            num_scalar_prefetch=0,
            grid=(N, n_hw),
            in_specs=[
                pl.BlockSpec((1, C, hw_tile), lambda n, h: (n, 0, h)),   # x tile
                pl.BlockSpec((C, Cr), lambda n, h: (0, 0)),              # w1
                pl.BlockSpec((1, Cr), lambda n, h: (0, 0)),              # b1
                pl.BlockSpec((Cr, C), lambda n, h: (0, 0)),              # w2
                pl.BlockSpec((1, C), lambda n, h: (0, 0)),               # b2
            ],
            out_specs=pl.BlockSpec((1, 1, C), lambda n, h: (n, 0, 0)),   # resident over h
            scratch_shapes=[pltpu.VMEM((1, C), jnp.float32)],            # pooled-sum acc
        ),
        compiler_params=pltpu.CompilerParams(
            dimension_semantics=("parallel", "arbitrary"),
            vmem_limit_bytes=vmem_limit,
        ),
    )(x, params["w1"], params["b1"], params["w2"], params["b2"])

    out = pl.pallas_call(
        scse_apply_kernel,
        out_shape=jax.ShapeDtypeStruct((N, C, HW), x.dtype),
        grid_spec=pltpu.PrefetchScalarGridSpec(
            num_scalar_prefetch=0,
            grid=(N, n_hw),
            in_specs=[
                pl.BlockSpec((1, 1, C), lambda n, h: (n, 0, 0)),         # cgate row
                pl.BlockSpec((1, C, hw_tile), lambda n, h: (n, 0, h)),   # x tile
                pl.BlockSpec((C, 1), lambda n, h: (0, 0)),               # ws
                pl.BlockSpec(memory_space=pltpu.MemorySpace.SMEM),       # bs scalar
            ],
            out_specs=pl.BlockSpec((1, C, hw_tile), lambda n, h: (n, 0, h)),
        ),
        compiler_params=pltpu.CompilerParams(
            dimension_semantics=("parallel", "parallel"),
            vmem_limit_bytes=vmem_limit,
        ),
    )(cgate, x, params["ws"], params["bs"])
    return out.reshape(N, C, H, W)


# ---------------------------------------------------------------------------
# Params / reference
# ---------------------------------------------------------------------------
def init_params(key, in_channels, reduction=16):
    cr = max(1, in_channels // reduction)
    k1, k2, k3, k4, k5, k6 = jax.random.split(key, 6)
    scale = 0.1
    return {
        # 1x1 conv weights stored directly in matmul layout (in_dim, out_dim)
        "w1": scale * jax.random.normal(k1, (in_channels, cr), jnp.float32),
        "b1": scale * jax.random.normal(k2, (1, cr), jnp.float32),
        "w2": scale * jax.random.normal(k3, (cr, in_channels), jnp.float32),
        "b2": scale * jax.random.normal(k4, (1, in_channels), jnp.float32),
        "ws": scale * jax.random.normal(k5, (in_channels, 1), jnp.float32),
        "bs": scale * jax.random.normal(k6, (1,), jnp.float32),
    }


def scse_ref(x_nchw, params):
    # Pure-JAX reference mirroring the PyTorch module semantics (NCHW).
    pooled = jnp.mean(x_nchw, axis=(2, 3))                                 # (N, C)
    h = jnp.maximum(pooled @ params["w1"] + params["b1"], 0.0)             # (N, Cr)
    cgate = jax.nn.sigmoid(h @ params["w2"] + params["b2"])                # (N, C)
    cgate = cgate[:, :, None, None]                                        # (N, C, 1, 1)
    slogit = jnp.einsum("nchw,co->nohw", x_nchw, params["ws"]) + params["bs"][0]
    sgate = jax.nn.sigmoid(slogit)                                         # (N, 1, H, W)
    return x_nchw * cgate + x_nchw * sgate


if __name__ == "__main__":
    key = jax.random.PRNGKey(0)
    kx, kp = jax.random.split(key)

    N, C, H, W = 2, 32, 16, 16          # in_channels=32, reduction=16 -> Cr=2
    x = jax.random.normal(kx, (N, C, H, W), jnp.float32)
    params = init_params(kp, C, reduction=16)
    ref = scse_ref(x, params)

    # Path A: fused single-pass kernel (plane fits in one block at this size).
    out = jax.block_until_ready(scse_block(x, params))
    assert out.shape == (N, C, H, W)
    assert jnp.allclose(out, ref, atol=1e-5, rtol=1e-5), "fused path mismatch vs reference"

    # Path B: force the HW-tiled two-pass path (used automatically when C*H*W
    # exceeds the per-block VMEM budget on real feature-map sizes).
    out_tiled = jax.block_until_ready(scse_block(x, params, hw_tile=128))
    assert jnp.allclose(out_tiled, ref, atol=1e-4, rtol=1e-4), "tiled path mismatch vs reference"

    print("KERNEL_OK")
</pallas_src>

<mosaic_0001>
module attributes {stable_mosaic.version = 11 : i64} {
  func.func @scse_fused_kernel(%arg0: i32, %arg1: memref<1x32x256xf32, #tpu.memory_space<vmem>>, %arg2: memref<32x2xf32, #tpu.memory_space<vmem>>, %arg3: memref<1x2xf32, #tpu.memory_space<vmem>>, %arg4: memref<2x32xf32, #tpu.memory_space<vmem>>, %arg5: memref<1x32xf32, #tpu.memory_space<vmem>>, %arg6: memref<32x1xf32, #tpu.memory_space<vmem>>, %arg7: memref<1xf32, #tpu.memory_space<smem>>, %arg8: memref<1x32x256xf32, #tpu.memory_space<vmem>>) attributes {dimension_semantics = [#tpu.dimension_semantics<parallel>], iteration_bounds = array<i64: 2>, scalar_prefetch = 0 : i64, scratch_operands = 0 : i64, tpu.core_type = #tpu.core_type<tc>, window_params = [{transform_indices = @transform_0, window_bounds = array<i64: 1, 32, 256>}, {pipeline_mode = #tpu.pipeline_mode<synchronous>, transform_indices = @transform_1, window_bounds = array<i64: 32, 2>}, {pipeline_mode = #tpu.pipeline_mode<synchronous>, transform_indices = @transform_2, window_bounds = array<i64: 1, 2>}, {pipeline_mode = #tpu.pipeline_mode<synchronous>, transform_indices = @transform_3, window_bounds = array<i64: 2, 32>}, {pipeline_mode = #tpu.pipeline_mode<synchronous>, transform_indices = @transform_4, window_bounds = array<i64: 1, 32>}, {pipeline_mode = #tpu.pipeline_mode<synchronous>, transform_indices = @transform_5, window_bounds = array<i64: 32, 1>}, {transform_indices = @transform_6, window_bounds = array<i64: 1>}, {transform_indices = @transform_7, window_bounds = array<i64: 1, 32, 256>}]} {
    %c0 = arith.constant 0 : index
    %c0_0 = arith.constant 0 : index
    %c0_1 = arith.constant 0 : index
    %0 = vector.load %arg1[%c0, %c0_0, %c0_1] : memref<1x32x256xf32, #tpu.memory_space<vmem>>, vector<1x32x256xf32>
    %cst = arith.constant dense<0.000000e+00> : vector<1x32xf32>
    %1 = vector.multi_reduction <add>, %0, %cst [2] : vector<1x32x256xf32> to vector<1x32xf32>
    %cst_2 = arith.constant 2.560000e+02 : f32
    %2 = vector.broadcast %cst_2 : f32 to vector<1x32xf32>
    %3 = arith.divf %1, %2 : vector<1x32xf32>
    %c0_3 = arith.constant 0 : index
    %c0_4 = arith.constant 0 : index
    %4 = vector.load %arg2[%c0_3, %c0_4] : memref<32x2xf32, #tpu.memory_space<vmem>>, vector<32x2xf32>
    %cst_5 = arith.constant dense<0.000000e+00> : vector<1x2xf32>
    %5 = tpu.matmul %3, %4, %cst_5 {dimension_numbers = #tpu.dot_dimension_numbers<[1], [0], [0], [1], [0, 0, 1, 1], [], []>} : vector<1x32xf32>, vector<32x2xf32>, vector<1x2xf32> -> vector<1x2xf32>
    %c0_6 = arith.constant 0 : index
    %c0_7 = arith.constant 0 : index
    %6 = vector.load %arg3[%c0_6, %c0_7] : memref<1x2xf32, #tpu.memory_space<vmem>>, vector<1x2xf32>
    %7 = arith.addf %5, %6 : vector<1x2xf32>
    %cst_8 = arith.constant 0.000000e+00 : f32
    %8 = vector.broadcast %cst_8 : f32 to vector<1x2xf32>
    %9 = arith.maximumf %7, %8 : vector<1x2xf32>
    %c0_9 = arith.constant 0 : index
    %c0_10 = arith.constant 0 : index
    %10 = vector.load %arg4[%c0_9, %c0_10] : memref<2x32xf32, #tpu.memory_space<vmem>>, vector<2x32xf32>
    %cst_11 = arith.constant dense<0.000000e+00> : vector<1x32xf32>
    %11 = tpu.matmul %9, %10, %cst_11 {dimension_numbers = #tpu.dot_dimension_numbers<[1], [0], [0], [1], [0, 0, 1, 1], [], []>} : vector<1x2xf32>, vector<2x32xf32>, vector<1x32xf32> -> vector<1x32xf32>
    %c0_12 = arith.constant 0 : index
    %c0_13 = arith.constant 0 : index
    %12 = vector.load %arg5[%c0_12, %c0_13] : memref<1x32xf32, #tpu.memory_space<vmem>>, vector<1x32xf32>
    %13 = arith.addf %11, %12 : vector<1x32xf32>
    %14 = arith.negf %13 : vector<1x32xf32>
    %15 = math.exp %14 : vector<1x32xf32>
    %cst_14 = arith.constant 1.000000e+00 : f32
    %16 = vector.broadcast %cst_14 : f32 to vector<1x32xf32>
    %17 = arith.addf %16, %15 : vector<1x32xf32>
    %18 = arith.divf %16, %17 : vector<1x32xf32>
    %c0_15 = arith.constant 0 : index
    %c0_16 = arith.constant 0 : index
    %19 = vector.load %arg6[%c0_15, %c0_16] : memref<32x1xf32, #tpu.memory_space<vmem>>, vector<32x1xf32>
    %20 = vector.shape_cast %19 : vector<32x1xf32> to vector<1x32x1xf32>
    %21 = vector.broadcast %20 : vector<1x32x1xf32> to vector<1x32x256xf32>
    %22 = arith.mulf %0, %21 : vector<1x32x256xf32>
    %cst_17 = arith.constant dense<0.000000e+00> : vector<1x256xf32>
    %23 = vector.multi_reduction <add>, %22, %cst_17 [1] : vector<1x32x256xf32> to vector<1x256xf32>
    %24 = vector.shape_cast %23 : vector<1x256xf32> to vector<1x1x256xf32>
    %c0_18 = arith.constant 0 : index
    %25 = memref.load %arg7[%c0_18] : memref<1xf32, #tpu.memory_space<smem>>
    %26 = vector.broadcast %25 : f32 to vector<1x1x256xf32>
    %27 = arith.addf %24, %26 : vector<1x1x256xf32>
    %28 = arith.negf %27 : vector<1x1x256xf32>
    %29 = math.exp %28 : vector<1x1x256xf32>
    %cst_19 = arith.constant 1.000000e+00 : f32
    %30 = vector.broadcast %cst_19 : f32 to vector<1x1x256xf32>
    %31 = arith.addf %30, %29 : vector<1x1x256xf32>
    %32 = arith.divf %30, %31 : vector<1x1x256xf32>
    %33 = vector.shape_cast %18 : vector<1x32xf32> to vector<1x32x1xf32>
    %34 = vector.broadcast %33 : vector<1x32x1xf32> to vector<1x32x256xf32>
    %35 = vector.broadcast %32 : vector<1x1x256xf32> to vector<1x32x256xf32>
    %36 = arith.addf %34, %35 : vector<1x32x256xf32>
    %37 = arith.mulf %0, %36 : vector<1x32x256xf32>
    %c0_20 = arith.constant 0 : index
    %c0_21 = arith.constant 0 : index
    %c0_22 = arith.constant 0 : index
    %38 = vector.load %arg8[%c0_20, %c0_21, %c0_22] : memref<1x32x256xf32, #tpu.memory_space<vmem>>, vector<1x32x256xf32>
    tpu.vector_store %arg8[%c0_20, %c0_21, %c0_22], %37 {strides = array<i32>} : memref<1x32x256xf32, #tpu.memory_space<vmem>>, vector<1x32x256xf32>,
    return
  }
  func.func @transform_0(%arg0: i32) -> (i32, i32, i32) {
    %c0_i32 = arith.constant 0 : i32
    %c0_i32_0 = arith.constant 0 : i32
    %c0_i32_1 = arith.constant 0 : i32
    return %arg0, %c0_i32, %c0_i32_0 : i32, i32, i32
  }
  func.func @transform_1(%arg0: i32) -> (i32, i32) {
    %c0_i32 = arith.constant 0 : i32
    %c0_i32_0 = arith.constant 0 : i32
    %c0_i32_1 = arith.constant 0 : i32
    return %c0_i32, %c0_i32_0 : i32, i32
  }
  func.func @transform_2(%arg0: i32) -> (i32, i32) {
    %c0_i32 = arith.constant 0 : i32
    %c0_i32_0 = arith.constant 0 : i32
    %c0_i32_1 = arith.constant 0 : i32
    return %c0_i32, %c0_i32_0 : i32, i32
  }
  func.func @transform_3(%arg0: i32) -> (i32, i32) {
    %c0_i32 = arith.constant 0 : i32
    %c0_i32_0 = arith.constant 0 : i32
    %c0_i32_1 = arith.constant 0 : i32
    return %c0_i32, %c0_i32_0 : i32, i32
  }
  func.func @transform_4(%arg0: i32) -> (i32, i32) {
    %c0_i32 = arith.constant 0 : i32
    %c0_i32_0 = arith.constant 0 : i32
    %c0_i32_1 = arith.constant 0 : i32
    return %c0_i32, %c0_i32_0 : i32, i32
  }
  func.func @transform_5(%arg0: i32) -> (i32, i32) {
    %c0_i32 = arith.constant 0 : i32
    %c0_i32_0 = arith.constant 0 : i32
    %c0_i32_1 = arith.constant 0 : i32
    return %c0_i32, %c0_i32_0 : i32, i32
  }
  func.func @transform_6(%arg0: i32) -> i32 {
    %c0_i32 = arith.constant 0 : i32
    %c0_i32_0 = arith.constant 0 : i32
    return %c0_i32 : i32
  }
  func.func @transform_7(%arg0: i32) -> (i32, i32, i32) {
    %c0_i32 = arith.constant 0 : i32
    %c0_i32_0 = arith.constant 0 : i32
    %c0_i32_1 = arith.constant 0 : i32
    return %arg0, %c0_i32, %c0_i32_0 : i32, i32, i32
  }
}

</mosaic_0001>

<bundles_post_ra>
// kernel: tpu_custom_call.1
= control target key start
LH: loop header
LB: loop body
LE: loop exit
PB: predicated region body
PF: predicated region fallthrough
CT: control target
= control target key end

     0   :  { %s1674_s0 = inlined_call_operand.hbm [shape: f32[2,32,256], index: 0, kind: input, shape index: {}]   ;;  %s1675_s1 = inlined_call_operand.hbm [shape: f32[32,2], index: 1, kind: input, shape index: {}]   ;;  %s1676_s2 = inlined_call_operand.hbm [shape: f32[1,2], index: 2, kind: input, shape index: {}]   ;;  %s1677_s3 = inlined_call_operand.hbm [shape: f32[2,32], index: 3, kind: input, shape index: {}]   ;;  %s1678_s4 = inlined_call_operand.hbm [shape: f32[1,32], index: 4, kind: input, shape index: {}]   ;;  %s1679_s5 = inlined_call_operand.hbm [shape: f32[32,1], index: 5, kind: input, shape index: {}]   ;;  %s1680_s6 = inlined_call_operand.<no memory space> [shape: f32[1], index: 6, kind: input, shape index: {}]   ;;  %s1681_s7 = inlined_call_operand.hbm [shape: f32[2,32,256], index: 7, kind: output, shape index: {}]  }
   0x1   :  { %12 = sst [smem:[#allocation2]] %s1680_s6 }
   0x2   :  { %13 = vsyncpa [#allocation4], 0 }
   0x3   :  { %15 = vsyncpa [#allocation4 + $0x1], 0 }
   0x4   :  { %16 = vsyncpa [#allocation7], 0 }
   0x5   :  { %17 = vsyncpa [#allocation10], 0 }
   0x6   :  { %18 = vsyncpa [#allocation13], 0 }
   0x7   :  { %19 = vsyncpa [#allocation5], 0 }
   0x8   :  { %21 = vsyncpa [#allocation5 + $0x1], 0  ;;  %s1322_s26 = smov 0   ;;  %s1324_s27 = smov 0  }
   0x9   :  { %s1326_s28 = smov 0   ;;  %s1328_s29 = smov 0  }
   0xa LB: > { %s1262_s6 = smov [#allocation6]   ;;  %s1343_s8 = sadd.s32 4294967295, %s1260_s29   ;;  %s1260_s29 = sphi %s1328_s29, %s1706_s29   ;;  %s1256_s28 = sphi %s1326_s28, %s1705_s28   ;;  %s1252_s27 = sphi %s1324_s27, %s1704_s27   ;;  %s1248_s26 = sphi %s1322_s26, %s1703_s26  }
   0xb   : > { %s222_s30 = sshll.u32 %s1262_s6, 4  ;;  %p831_p0 = scmp.ge.s32.totalorder %s1260_s29, 1  ;;  %s1348_s30 = int_to_ptr.vmem [resolvable:$true] %s222_s30 }
   0xc   : > { %p1682_p1 = scmp.eq.s32.totalorder %s1343_s8, 0  ;;  %p210_p2 = scmp.lt.s32.totalorder %s1260_s29, 3 }
   0xd   : > { %s1263_s10 = smov [#allocation9]   ;;  %s1264_s13 = smov [#allocation8]  }
   0xe   : > { %p1350_p3 = pnand %p831_p0, %p210_p2  ;;  %s247_s11 = sshll.u32 %s1263_s10, 4  ;;  %s1363_s11 = int_to_ptr.vmem [resolvable:$true] %s247_s11 }
   0xf   : > { %s236_s14 = sshll.u32 %s1264_s13, 4  ;;  %s1012_s17 = scalar_lea.hbm %s1675_s1, 512  ;;  %s1365_s14 = int_to_ptr.vmem [resolvable:$true] %s236_s14 }
  0x10   : > { %s1685_s9 = scalar_select %p1350_p3, 1, 0 }
  0x11   : > { %p915_p5 = pneg %p1350_p3  ;;  %p1013_p7 = scmp.ne.s32.totalorder %s1675_s1, %s1012_s17 }
  0x12   : > { %p1019_p11 = scmp.lt.u32.totalorder %s1012_s17, %s1675_s1 }
  0x13   : > { %p1359_p6 = pnand %p915_p5, %p1682_p1 }
  0x15   : > { %p1375_p8 = pneg %p1359_p6 }
  0x17   : > { %p1015_p9 = pnand %p1375_p8, %p1013_p7 }
  0x19   : > { %p1016_p10 = pneg %p1015_p9 }
  0x1b   : > { %p1021_p12 = pnand %p1019_p11, %p1016_p10 }
  0x1d   : > { %1024 = shalt.err (!%p1021_p12)
}
  0x1e   : > { %s1025_s23 = scalar_lea.vmem %s1348_s30, 512  ;;  %p1033_p5 = scmp.lt.s32.totalorder %s1348_s30, %s1348_s30 }
  0x1f   : > { %p1026_p13 = scmp.ne.s32.totalorder %s1348_s30, %s1025_s23  ;;  %p1034_p4 = scmp.lt.s32.totalorder %s1025_s23, %s1025_s23 }
  0x21   : > { %p1028_p0 = pnand %p1026_p13, %p1375_p8  ;;  %p1035_p7 = por %p1034_p4, %p1033_p5 }
  0x23   : > { %p1029_p2 = pneg %p1028_p0 }
  0x25   : > { %p1036_p9 = pnand %p1035_p7, %p1029_p2 }
  0x27   : > { %1039 = shalt.err (!%p1036_p9)
}
  0x28   : > { %s1265_s24 = smov 128   ;;  %s1266_s25 = smov 8  }
  0x29   : > { %918 = dma.hbm_to_vmem [thread:$0]  (!%p1359_p6), %s1675_s1, 512, %s1348_s30, [#allocation7], %s1265_s24, %s1265_s24, %s1266_s25  }
  0x2a   : > { %s1040_s16 = scalar_lea.hbm %s1677_s3, 32 }
  0x2b   : > { %p1041_p4 = scmp.ne.s32.totalorder %s1677_s3, %s1040_s16  ;;  %p1047_p12 = scmp.lt.u32.totalorder %s1040_s16, %s1677_s3 }
  0x2d   : > { %p1043_p10 = pnand %p1041_p4, %p1375_p8 }
  0x2f   : > { %p1044_p11 = pneg %p1043_p10 }
  0x31   : > { %p1049_p13 = pnand %p1047_p12, %p1044_p11 }
  0x33   : > { %1052 = shalt.err (!%p1049_p13)
}
  0x34   : > { %s1053_s30 = scalar_lea.vmem %s1363_s11, 32  ;;  %p1061_p7 = scmp.lt.s32.totalorder %s1363_s11, %s1363_s11 }
  0x35   : > { %p1054_p0 = scmp.ne.s32.totalorder %s1363_s11, %s1053_s30  ;;  %p1062_p9 = scmp.lt.s32.totalorder %s1053_s30, %s1053_s30 }
  0x37   : > { %p1056_p2 = pnand %p1054_p0, %p1375_p8  ;;  %p1063_p4 = por %p1062_p9, %p1061_p7 }
  0x39   : > { %p1057_p5 = pneg %p1056_p2 }
  0x3b   : > { %p1064_p10 = pnand %p1063_p4, %p1057_p5 }
  0x3d   : > { %1067 = shalt.err (!%p1064_p10)
}
  0x3e   : > { %924 = dma.hbm_to_vmem [thread:$0]  (!%p1359_p6), %s1677_s3, 32, %s1363_s11, [#allocation10]  }
  0x3f   : > { %s1068_s13 = scalar_lea.hbm %s1676_s2, 16 }
  0x40   : > { %p1069_p11 = scmp.ne.s32.totalorder %s1676_s2, %s1068_s13  ;;  %p1075_p0 = scmp.lt.u32.totalorder %s1068_s13, %s1676_s2 }
  0x42   : > { %p1071_p12 = pnand %p1069_p11, %p1375_p8 }
  0x44   : > { %p1072_p13 = pneg %p1071_p12 }
  0x46   : > { %p1077_p2 = pnand %p1075_p0, %p1072_p13 }
  0x48   : > { %1080 = shalt.err (!%p1077_p2)
}
  0x49   : > { %s1081_s11 = scalar_lea.vmem %s1365_s14, 16  ;;  %s1088_s19 = scalar_lea.vmem %s1365_s14, 32 }
  0x4a   : > { %p1082_p5 = scmp.ne.s32.totalorder %s1365_s14, %s1081_s11  ;;  %p1089_p4 = scmp.lt.s32.totalorder %s1365_s14, %s1365_s14 }
  0x4b   : > { %p1090_p10 = scmp.lt.s32.totalorder %s1088_s19, %s1081_s11 }
  0x4c   : > { %p1084_p7 = pnand %p1082_p5, %p1375_p8 }
  0x4d   : > { %p1091_p11 = por %p1090_p10, %p1089_p4 }
  0x4e   : > { %p1085_p9 = pneg %p1084_p7 }
  0x50   : > { %p1092_p12 = pnand %p1091_p11, %p1085_p9 }
  0x52   : > { %1095 = shalt.err (!%p1092_p12)
}
  0x53   : > { %921 = dma.hbm_to_vmem [thread:$0]  (!%p1359_p6), %s1676_s2, 16, %s1365_s14, [#allocation7]  }
  0x54   : > { %s1267_s22 = smov [#allocation11]   ;;  %s1268_s6 = smov [#allocation12]  }
  0x55   : > { %s258_s23 = sshll.u32 %s1267_s22, 4  ;;  %s268_s10 = sshll.u32 %s1268_s6, 4  ;;  %s259_s23 = int_to_ptr.vmem [resolvable:$true] %s258_s23  ;;  %s269_s10 = int_to_ptr.vmem [resolvable:$true] %s268_s10 }
  0x56   : > { %s1096_s16 = scalar_lea.hbm %s1678_s4, 16 }
  0x57   : > { %p1097_p13 = scmp.ne.s32.totalorder %s1678_s4, %s1096_s16  ;;  %p1103_p5 = scmp.lt.u32.totalorder %s1096_s16, %s1678_s4 }
  0x59   : > { %p1099_p0 = pnand %p1097_p13, %p1375_p8 }
  0x5b   : > { %p1100_p2 = pneg %p1099_p0 }
  0x5d   : > { %p1105_p7 = pnand %p1103_p5, %p1100_p2 }
  0x5f   : > { %1108 = shalt.err (!%p1105_p7)
}
  0x60   : > { %s1109_s14 = scalar_lea.vmem %s259_s23, 16  ;;  %s1116_s21 = scalar_lea.vmem %s259_s23, 32 }
  0x61   : > { %p1110_p9 = scmp.ne.s32.totalorder %s259_s23, %s1109_s14  ;;  %p1117_p11 = scmp.lt.s32.totalorder %s259_s23, %s259_s23 }
  0x62   : > { %p1118_p12 = scmp.lt.s32.totalorder %s1116_s21, %s1109_s14 }
  0x63   : > { %p1112_p4 = pnand %p1110_p9, %p1375_p8 }
  0x64   : > { %p1119_p1 = por %p1118_p12, %p1117_p11 }
  0x65   : > { %p1113_p10 = pneg %p1112_p4 }
  0x67   : > { %p1120_p3 = pnand %p1119_p1, %p1113_p10 }
  0x69   : > { %1123 = shalt.err (!%p1120_p3)
}
  0x6a   : > { %927 = dma.hbm_to_vmem [thread:$0]  (!%p1359_p6), %s1678_s4, 16, %s259_s23, [#allocation10]  }
  0x6b   : > { %s1124_s15 = scalar_lea.hbm %s1679_s5, 512 }
  0x6c   : > { %p1125_p13 = scmp.ne.s32.totalorder %s1679_s5, %s1124_s15  ;;  %p1131_p3 = scmp.lt.u32.totalorder %s1124_s15, %s1679_s5 }
  0x6e   : > { %p1127_p0 = pnand %p1125_p13, %p1375_p8 }
  0x70   : > { %p1128_p1 = pneg %p1127_p0 }
  0x72   : > { %p1133_p2 = pnand %p1131_p3, %p1128_p1 }
  0x74   : > { %1136 = shalt.err (!%p1133_p2)
}
  0x75   : > { %s1137_s19 = scalar_lea.vmem %s269_s10, 512  ;;  %p1145_p4 = scmp.lt.s32.totalorder %s269_s10, %s269_s10 }
  0x76   : > { %p1138_p5 = scmp.ne.s32.totalorder %s269_s10, %s1137_s19  ;;  %p1146_p10 = scmp.lt.s32.totalorder %s1137_s19, %s1137_s19 }
  0x78   : > { %p1140_p7 = pnand %p1138_p5, %p1375_p8  ;;  %p1147_p11 = por %p1146_p10, %p1145_p4 }
  0x7a   : > { %p1141_p9 = pneg %p1140_p7 }
  0x7c   : > { %p1148_p12 = pnand %p1147_p11, %p1141_p9 }
  0x7e   : > { %1151 = shalt.err (!%p1148_p12)
}
  0x7f   : > { %930 = dma.hbm_to_vmem [thread:$0]  (!%p1359_p6), %s1679_s5, 512, %s269_s10, [#allocation13], %s1265_s24, %s1265_s24, %s1266_s25  }
  0x80   : > { %s830_s12 = sadd.s32 4294967294, %s1260_s29   ;;  %s1487_s20 = sadd.s32 1, %s1260_s29  }
  0x81   : > { %s34_s21 = sadd.s32 1, %s1256_s28  ;;  %s31_s30 = ssub.s32 %s1260_s29, %s1487_s20 }
  0x82   : > { %p41_p8 = scmp.ne.s32.totalorder %s1256_s28, %s1252_s27  ;;  %p32_p13 = scmp.eq.s32.totalorder %s31_s30, 0 }
  0x83   : > { %p42_p0 = scmp.eq.s32.totalorder %s1260_s29, 0  ;;  %p47_p1 = scmp.ne.s32.totalorder %s1252_s27, %s1248_s26 }
  0x84   : > { %p197_p3 = scmp.eq.s32.totalorder %s1343_s8, 1  ;;  %p1688_p5 = scmp.eq.s32.totalorder %s1343_s8, 0 }
  0x85   : > { %s1499_s22 = scalar_select %p32_p13, %s1256_s28, %s34_s21  }
  0x86   : > { %p43_p2 = por %p42_p0, %p41_p8  ;;  %p1503_p7 = por %p1688_p5, %p47_p1 }
  0x87   : > { %p1507_p6 = por %p197_p3, %p41_p8  ;;  %p203_p9 = scmp.eq.s32.totalorder %s830_s12, 1 }
  0x88   : > { %p944_p4 = scmp.lt.s32.totalorder %s1260_s29, 2  ;;  %s285_s25 = sand.u32 1, %s1256_s28  }
  0x89   : > { %s1690_s24 = scalar_select %p1507_p6, 1, 0 }
  0x8a   : > { %p1513_p10 = por %p203_p9, %p47_p1  ;;  %s838_s13 = sshll.u32 %s285_s25, 6 }
  0x8b   : > { %s860_s15 = sshll.u32 %s1260_s29, 10  ;;  %s289_s11 = scalar_lea.vmem [#allocation3], %s838_s13 }
  0x8c   : > { %s1691_s10 = scalar_select %p1513_p10, 1, 0 }
  0x8d   : > { %s1521_s18 = scalar_lea.hbm %s1674_s0, %s860_s15  ;;  %s296_s19 = sshll.u32 %s289_s11, 4  ;;  %s1527_s19 = int_to_ptr.vmem [resolvable:$true] %s296_s19 }
  0x8e   : > { %p1523_p11 = pnand %p944_p4, %p43_p2  ;;  %s1529_s14 = scalar_lea.sflag [#allocation4], %s285_s25 }
  0x8f   : > { %s1152_s12 = scalar_lea.hbm %s1521_s18, 1024  ;;  %s1157_s13 = scalar_lea.hbm %s1674_s0, 2048 }
  0x90   : > { %p1153_p12 = scmp.ne.s32.totalorder %s1521_s18, %s1152_s12  ;;  %p1154_p8 = pneg %p1523_p11 }
  0x91   : > { %p1158_p1 = scmp.lt.u32.totalorder %s1521_s18, %s1674_s0  ;;  %p1159_p3 = scmp.lt.u32.totalorder %s1157_s13, %s1152_s12 }
  0x92   : > { %p1155_p13 = pnand %p1154_p8, %p1153_p12  ;;  %p1161_p5 = scmp.lt.u32.totalorder %s1152_s12, %s1521_s18 }
  0x93   : > { %p1160_p2 = por %p1159_p3, %p1158_p1 }
  0x94   : > { %p1156_p0 = pneg %p1155_p13 }
  0x95   : > { %p1162_p9 = por %p1161_p5, %p1160_p2 }
  0x97   : > { %p1163_p4 = pnand %p1162_p9, %p1156_p0 }
  0x99   : > { %1166 = shalt.err (!%p1163_p4)
}
  0x9a   : > { %s1167_s25 = scalar_lea.vmem %s1527_s19, 1024  ;;  %s1269_s17 = smov [#allocation3]  }
  0x9b   : > { %p1168_p12 = scmp.ne.s32.totalorder %s1527_s19, %s1167_s25  ;;  %s1172_s11 = sshll.u32 %s1269_s17, 4  ;;  %s1173_s11 = int_to_ptr.vmem [resolvable:$false] %s1172_s11 }
  0x9c   : > { %s1174_s21 = scalar_lea.vmem %s1173_s11, 2048  ;;  %p1175_p6 = scmp.lt.s32.totalorder %s1527_s19, %s1173_s11 }
  0x9d   : > { %p1170_p13 = pnand %p1168_p12, %p1154_p8  ;;  %p1176_p1 = scmp.lt.s32.totalorder %s1174_s21, %s1167_s25 }
  0x9f   : > { %p1171_p10 = pneg %p1170_p13  ;;  %p1177_p3 = por %p1176_p1, %p1175_p6 }
  0xa1   : > { %p1178_p2 = pnand %p1177_p3, %p1171_p10 }
  0xa3   : > { %1181 = shalt.err (!%p1178_p2)
}
  0xa4   : > { %s1270_s12 = smov 256   ;;  %s1271_s30 = smov 16  }
  0xa5   : > { %934 = dma.hbm_to_vmem [thread:$0]  (!%p1523_p11), %s1521_s18, 1024, %s1527_s19, %s1529_s14, %s1270_s12, %s1270_s12, %s1271_s30  }
  0xa6   : > { %p1693_p8 = scmp.ne.s32.totalorder %s1685_s9, 0 }
  0xa7   : > { %s1560_s13 = sand.u32 (!%p1693_p8), 1, %s1252_s27  }
  0xa8   : > { %308 = sbr.rel (%p1693_p8) target bundleno = 946 (0x3b2), region = 48  ;;  %s842_s15 = sshll.u32 (!%p1693_p8), %s1560_s13, 6 }
  0xa9   : > { %s311_s16 = scalar_lea.sflag (!%p1693_p8), [#allocation4], %s1560_s13  ;;  %s314_s25 = scalar_lea.vmem (!%p1693_p8), [#allocation3], %s842_s15 }
  0xaf   : > { %1227 = dma.done.wait (%p1503_p7), %s311_s16, 1024  }
  0xb0   : > { %1229 = vsyncadd (%p1503_p7), %s311_s16, 4294966272  ;;  %p1694_p6 = scmp.eq.s32.totalorder %s1343_s8, 0 }
  0xb2   : > { %1231 = dma.done.wait (%p1694_p6), [#allocation7], 528   ;;  %p1695_p10 = pmov %p1694_p6 }
  0xb3   : > { %p1696_p11 = pmov %p1694_p6 }
  0xb4   : > { %1233 = vsyncadd (%p1695_p10), [#allocation7], 4294966768 }
  0xb5   : > { %1235 = dma.done.wait (%p1696_p11), [#allocation10], 48   ;;  %p1697_p0 = pmov %p1694_p6 }
  0xb7   : > { %1237 = vsyncadd (%p1697_p0), [#allocation10], 4294967248  ;;  %p1698_p5 = pmov %p1697_p0 }
  0xb8   : > { %p1699_p9 = pmov %p1697_p0 }
  0xb9   : > { %1239 = dma.done.wait (%p1698_p5), [#allocation13], 512  }
  0xba   : > { %1241 = vsyncadd (%p1699_p9), [#allocation13], 4294966784  ;;  %v1582_v0 = vld [vmem:[%s314_s25] sm:$0xff]  ;;  %v1584_v1 = vld [vmem:[%s314_s25 + $0x8] sm:$0xff]  ;;  %v1272_v15 = vmov 0.0|0.0   ;;  %vm1273_vm0 = vmmov 0   ;;  %v399_v20 = vlaneseq }
  0xbb   : > { %v1586_v2 = vld [vmem:[%s314_s25 + $0x20] sm:$0xff]  ;;  %v373_v3 = vadd.f32 %v1584_v1, %v1582_v0  ;;  %v1590_v4 = vld [vmem:[%s314_s25 + $0x28] sm:$0xff]  ;;  %v1592_v5 = vld [vmem:[%s314_s25 + $0x10] sm:$0xff]  ;;  %885 = vmatprep.subr.bf16.mxu0 %v1272_v15  ;;  %v1274_v19 = vmov 0.0   ;;  %vm410_vm1 = vcmask 130112   ;;  %vm417_vm2 = vcmask 195712  }
  0xbc   : > { %v1594_v6 = vld [vmem:[%s314_s25 + $0x18] sm:$0xff]  ;;  %v379_v7 = vadd.f32 %v1590_v4, %v1586_v2  ;;  %v1598_v8 = vld [vmem:[%s314_s25 + $0x30] sm:$0xff]  ;;  %v390_v12 = vld [vmem:[#allocation6] sm:$0xff]  ;;  %877 = vmatprep.mubr.msk.f32.mxu0 %vm1273_vm0, %v1274_v19  ;;  %880 = vmatprep.subr.mxu1 %v1274_v19  ;;  %v400_v21 = vand.u32 127, %v399_v20  ;;  %v402_v22 = vshrl.u32 %v399_v20, 7  ;;  %vm424_vm3 = vcmask 261312  }
  0xbd   : > { %v1600_v9 = vld [vmem:[%s314_s25 + $0x38] sm:$0xff]  ;;  %374 = vadd.xlane.f32.xlu0 %v373_v3  ;;  %v376_v10 = vadd.f32 %v1594_v6, %v1592_v5  ;;  %v391_v13 = vld [vmem:[#allocation6 + $0x8] sm:$0xff]  ;;  %v392_v16 = vld [vmem:[#allocation6 + $0x10] sm:$0xff]  ;;  %882 = vmatprep.mubr.msk.f32.mxu1 %vm1273_vm0, %v1274_v19  ;;  %vm426_vm4 = vcmask 261120   ;;  %vm506_vm5 = vcmask 1041408   ;;  %v1275_v48 = vmov 0  }
  0xbe   : > { %380 = vadd.xlane.f32.xlu1 %v379_v7  ;;  %v382_v11 = vadd.f32 %v1600_v9, %v1598_v8  ;;  %v886_v14 = vpack.c.bf16 %v391_v13, %v390_v12  ;;  %v393_v17 = vld [vmem:[#allocation6 + $0x18] sm:$0xff]  ;;  %v405_v23 = vadd.s32 4294967288, %v400_v21  ;;  %v412_v25 = vadd.s32 4294967280, %v400_v21  ;;  %v500_v45 = vld [vmem:[#allocation9] sm:$0x3]  ;;  %v587_v46 = vld [vmem:[#allocation12 + $0x8] sm:$0xff]  ;;  %998 = vset.pattern.permute.xlu0 %v1275_v48 }
  0xbf   : > { %v889_v18 = vpack.c.bf16 %v393_v17, %v392_v16  ;;  %v419_v26 = vadd.s32 4294967272, %v400_v21  ;;  %v403_v28 = vsub.s32 %v400_v21, %v402_v22  ;;  %881 = vmatpush3.msk.msra.mxu1 %vm506_vm5, %v500_v45  ;;  %v586_v47 = vld [vmem:[#allocation12] sm:$0xff]  ;;  %999 = vset.pattern.permute.xlu1 %v1275_v48  ;;  %v588_v49 = vld [vmem:[#allocation12 + $0x10] sm:$0xff]  ;;  %v589_v50 = vld [vmem:[#allocation12 + $0x18] sm:$0xff]  ;;  %vm502_vm6 = vcmask 15360   ;;  %s636_s9 = sld [smem:[#allocation2]] }
  0xc0   : > { %887 = vmatpush3.bf16.msra.mxu0 %v886_v14  ;;  %v408_v30 = vsub.s32 %v405_v23, %v402_v22  ;;  %v415_v31 = vsub.s32 %v412_v25, %v402_v22  ;;  %v394_v51 = vld [vmem:[#allocation8] sm:$0x1]  ;;  %v501_v56 = vld [vmem:[#allocation11] sm:$0x1]  ;;  %v654_v63 = vsub.s32 0, %v402_v22  ;;  %s364_s6 = scalar_lea.vmem [#allocation14], %s842_s15 }
  0xc1   : > { %377 = vadd.xlane.f32.xlu0 %v376_v10  ;;  %888 = vmatprep.subr.bf16.mxu0 %v1272_v15  ;;  %v422_v34 = vsub.s32 %v419_v26, %v402_v22  ;;  %s861_s18 = sshll.u32 %s1343_s8, 10  ;;  %s709_s19 = sshll.u32 %s364_s6, 4  ;;  %s1628_s19 = int_to_ptr.vmem [resolvable:$true] %s709_s19 }
  0xc2   : > { %383 = vadd.xlane.f32.xlu1 %v382_v11  ;;  %s1626_s17 = scalar_lea.hbm %s1681_s7, %s861_s18  ;;  %s696_s8 = scalar_lea.sflag [#allocation5], %s1560_s13 }
  0xc3   : > { %s1182_s11 = scalar_lea.vmem %s1628_s19, 1024  ;;  %p1700_p4 = scmp.ne.s32.totalorder %s1690_s24, 0 }
  0xc4   : > { %890 = vmatpush3.bf16.msra.mxu0 %v889_v18  ;;  %p1183_p7 = scmp.ne.s32.totalorder %s1628_s19, %s1182_s11  ;;  %s1276_s21 = smov [#allocation14]  }
  0xc5   : > { %s1186_s12 = sshll.u32 %s1276_s21, 4  ;;  %s1187_s12 = int_to_ptr.vmem [resolvable:$false] %s1186_s12 }
  0xc6   : > { %p1184_p12 = pnand %p1183_p7, %p1700_p4  ;;  %s1188_s30 = scalar_lea.vmem %s1187_s12, 2048 }
  0xc7   : > { %p1189_p1 = scmp.lt.s32.totalorder %s1628_s19, %s1187_s12  ;;  %p1190_p3 = scmp.lt.s32.totalorder %s1188_s30, %s1182_s11 }
  0xc8   : > { %p1185_p13 = pneg %p1184_p12 }
  0xc9   : > { %p1191_p2 = por %p1190_p3, %p1189_p1 }
  0xcb   : > { %p1192_p8 = pnand %p1191_p2, %p1185_p13 }
  0xd3   : > { %597 = vperm.xlu1 %999, %v587_v46  }
  0xd7   : > { %592 = vperm.xlu0 %998, %v586_v47   ;;  %602 = vperm.xlu1 %999, %v588_v49  }
  0xdb   : > { %607 = vperm.xlu1 %999, %v589_v50  }
 0x14a   : > { %v375_v24 = vpop.xlane.xlu0 %374 }
 0x14b   : > { %v381_v27 = vpop.xlane.xlu1 %380  ;;  %v386_v29 = vmul.f32 0.00390625, %v375_v24 }
 0x14c   : > { %v388_v32 = vmul.f32 0.00390625, %v381_v27 }
 0x14d   : > { %v404_v38 = vrot.slane %v386_v29, %v403_v28 }
 0x14e   : > { %v378_v33 = vpop.xlane.xlu0 %377  ;;  %v416_v40 = vrot.slane %v388_v32, %v415_v31 }
 0x14f   : > { %v387_v35 = vmul.f32 0.00390625, %v378_v33  ;;  %v384_v36 = vpop.xlane.xlu1 %383 }
 0x150   : > { %v389_v37 = vmul.f32 0.00390625, %v384_v36 }
 0x151   : > { %v409_v39 = vrot.slane %v387_v35, %v408_v30 }
 0x152   : > { %v423_v41 = vrot.slane %v389_v37, %v422_v34 }
 0x153   : > { %v411_v42 = vsel %vm410_vm1, %v409_v39, %v404_v38  ;;  %v598_v10 = vpop.permute.xlu1 %597  ;;  %v637_v39 = vstv %s636_s9 }
 0x154   : > { %v418_v43 = vsel %vm417_vm2, %v416_v40, %v411_v42  ;;  %v612_v13 = vmul.f32 %v598_v10, %v1592_v5  ;;  %v613_v15 = vmul.f32 %v598_v10, %v1594_v6 }
 0x155   : > { %v425_v44 = vsel %vm424_vm3, %v423_v41, %v418_v43 }
 0x156   : > { %878 = vmatmul.mubr.msk.f32.vlgmr.msra.gmra.mrb[0].mxu0 %vm426_vm4, %v425_v44  ;;  %v593_v11 = vpop.permute.xlu0 %592 }
 0x157   : > { %v603_v12 = vpop.permute.xlu1 %602  ;;  %v610_v14 = vmul.f32 %v593_v11, %v1582_v0  ;;  %v611_v16 = vmul.f32 %v593_v11, %v1584_v1 }
 0x158   : > { %v614_v17 = vmul.f32 %v603_v12, %v1586_v2  ;;  %v615_v19 = vmul.f32 %v603_v12, %v1590_v4 }
 0x159   : > { %v618_v18 = vadd.f32 %v612_v13, %v610_v14  ;;  %v627_v20 = vadd.f32 %v613_v15, %v611_v16 }
 0x15b   : > { %v608_v21 = vpop.permute.xlu1 %607  ;;  %v619_v22 = vadd.f32 %v618_v18, %v614_v17  ;;  %v628_v24 = vadd.f32 %v627_v20, %v615_v19 }
 0x15c   : > { %v616_v23 = vmul.f32 %v608_v21, %v1598_v8  ;;  %v617_v25 = vmul.f32 %v608_v21, %v1600_v9 }
 0x15e   : > { %v620_v26 = vadd.f32 %v619_v22, %v616_v23  ;;  %v629_v27 = vadd.f32 %v628_v24, %v617_v25 }
 0x160   : > { %v621_v28 = vrot.slane %v620_v26, 4  ;;  %v630_v29 = vrot.slane %v629_v27, 4 }
 0x162   : > { %v622_v30 = vadd.f32 %v621_v28, %v620_v26  ;;  %v631_v31 = vadd.f32 %v630_v29, %v629_v27 }
 0x164   : > { %v623_v32 = vrot.slane %v622_v30, 2  ;;  %v632_v33 = vrot.slane %v631_v31, 2 }
 0x166   : > { %v624_v34 = vadd.f32 %v623_v32, %v622_v30  ;;  %v633_v35 = vadd.f32 %v632_v33, %v631_v31 }
 0x168   : > { %v625_v36 = vrot.slane %v624_v34, 1  ;;  %v634_v37 = vrot.slane %v633_v35, 1 }
 0x16a   : > { %v626_v38 = vadd.f32 %v625_v36, %v624_v34  ;;  %v635_v40 = vadd.f32 %v634_v37, %v633_v35 }
 0x16c   : > { %v638_v41 = vadd.f32 %v637_v39, %v626_v38  ;;  %v639_v42 = vadd.f32 %v637_v39, %v635_v40 }
 0x16e   : > { %v853_v43 = vmul.f32 -1.442695, %v638_v41  ;;  %v854_v44 = vmul.f32 -1.442695, %v639_v42 }
 0x229   : > { %v495_v52 = vpop.f32.mrb[0].mxu0 }
 0x22a   : > { %v496_v53 = vadd.f32 %v495_v52, %v394_v51  ;;  %v879_v54 = vpop.f32.mrb[1].mxu0 }
 0x22c   : > { %v499_v55 = vmax.f32 %v496_v53, 0.0 }
 0x22e   : > { %883 = vmatmul.mubr.msk.f32.vlgmr.msra.gmra.mrb[0].mxu1 %vm502_vm6, %v499_v55 }
 0x301   : > { %v576_v57 = vpop.f32.mrb[0].mxu1 }
 0x302   : > { %v577_v58 = vadd.f32 %v576_v57, %v501_v56  ;;  %v884_v59 = vpop.f32.mrb[1].mxu1 }
 0x304   : > { %v852_v60 = vmul.f32 -1.442695, %v577_v58 }
 0x306   : > { %1000 = vpow2.f32 %v852_v60 }
 0x310   : > { %v1001_v61 = vpop.eup %1000 }
 0x311   : > { %v583_v62 = vadd.f32 1.0, %v1001_v61 }
 0x313   : > { %1002 = vrcp.f32 %v583_v62 }
 0x314   : > { %1004 = vpow2.f32 %v853_v43 }
 0x315   : > { %1006 = vpow2.f32 %v854_v44 }
 0x31d   : > { %v1003_v3 = vpop.eup %1002 }
 0x31e   : > { %v655_v7 = vrot.slane %v1003_v3, %v654_v63  ;;  %v1005_v45 = vpop.eup %1004 }
 0x31f   : > { %v1007_v46 = vpop.eup %1006  ;;  %v646_v47 = vadd.f32 1.0, %v1005_v45 }
 0x320   : > { %657 = vbcast.lane.b32.xlu1 %v655_v7, 256  ;;  %v647_v48 = vadd.f32 1.0, %v1007_v46 }
 0x321   : > { %1008 = vrcp.f32 %v646_v47 }
 0x322   : > { %1010 = vrcp.f32 %v647_v48 }
 0x324   : > { %661 = vbcast.lane.b32.xlu1 %v655_v7, 264 }
 0x328   : > { %665 = vbcast.lane.b32.xlu1 %v655_v7, 272 }
 0x32b   : > { %v1009_v49 = vpop.eup %1008 }
 0x32c   : > { %669 = vbcast.lane.b32.xlu1 %v655_v7, 280  ;;  %v1011_v50 = vpop.eup %1010 }
 0x392   : > { %v658_v51 = vpop.permute.xlu1 %657 }
 0x393   : > { %v671_v52 = vadd.f32 %v1009_v49, %v658_v51  ;;  %v672_v53 = vadd.f32 %v1011_v50, %v658_v51 }
 0x395   : > { %v679_v54 = vmul.f32 %v671_v52, %v1582_v0  ;;  %v680_v55 = vmul.f32 %v672_v53, %v1584_v1 }
 0x396   : > { %v662_v56 = vpop.permute.xlu1 %661 }
 0x397   : > { %687 = vst [vmem:[%s364_s6] sm:$0xff] %v679_v54  ;;  %688 = vst [vmem:[%s364_s6 + $0x8] sm:$0xff] %v680_v55  ;;  %v673_v57 = vadd.f32 %v1009_v49, %v662_v56  ;;  %v674_v58 = vadd.f32 %v1011_v50, %v662_v56 }
 0x399   : > { %v681_v59 = vmul.f32 %v673_v57, %v1592_v5  ;;  %v682_v60 = vmul.f32 %v674_v58, %v1594_v6 }
 0x39a   : > { %v666_v61 = vpop.permute.xlu1 %665 }
 0x39b   : > { %689 = vst [vmem:[%s364_s6 + $0x10] sm:$0xff] %v681_v59  ;;  %690 = vst [vmem:[%s364_s6 + $0x18] sm:$0xff] %v682_v60  ;;  %v675_v62 = vadd.f32 %v1009_v49, %v666_v61  ;;  %v676_v63 = vadd.f32 %v1011_v50, %v666_v61 }
 0x39d   : > { %v683_v0 = vmul.f32 %v675_v62, %v1586_v2  ;;  %v684_v1 = vmul.f32 %v676_v63, %v1590_v4 }
 0x39e   : > { %v670_v3 = vpop.permute.xlu1 %669 }
 0x39f   : > { %691 = vst [vmem:[%s364_s6 + $0x20] sm:$0xff] %v683_v0  ;;  %692 = vst [vmem:[%s364_s6 + $0x28] sm:$0xff] %v684_v1  ;;  %v677_v7 = vadd.f32 %v1009_v49, %v670_v3  ;;  %v678_v5 = vadd.f32 %v1011_v50, %v670_v3 }
 0x3a1   : > { %v685_v2 = vmul.f32 %v677_v7, %v1598_v8  ;;  %v686_v4 = vmul.f32 %v678_v5, %v1600_v9 }
 0x3a3   : > { %693 = vst [vmem:[%s364_s6 + $0x30] sm:$0xff] %v685_v2  ;;  %694 = vst [vmem:[%s364_s6 + $0x38] sm:$0xff] %v686_v4 }
 0x3a4   : > { %1195 = shalt.err (!%p1192_p8)
}
 0x3a5   : > { %s1196_s15 = scalar_lea.hbm %s1626_s17, 1024  ;;  %s1200_s9 = scalar_lea.hbm %s1681_s7, 2048 }
 0x3a6   : > { %p1197_p6 = scmp.ne.s32.totalorder %s1626_s17, %s1196_s15  ;;  %p1201_p0 = scmp.lt.u32.totalorder %s1626_s17, %s1681_s7 }
 0x3a7   : > { %p1202_p5 = scmp.lt.u32.totalorder %s1200_s9, %s1196_s15  ;;  %p1204_p7 = scmp.lt.u32.totalorder %s1196_s15, %s1626_s17 }
 0x3a8   : > { %p1198_p10 = pnand %p1197_p6, %p1700_p4 }
 0x3a9   : > { %p1203_p9 = por %p1202_p5, %p1201_p0 }
 0x3aa   : > { %p1199_p11 = pneg %p1198_p10 }
 0x3ab   : > { %p1205_p12 = por %p1204_p7, %p1203_p9 }
 0x3ad   : > { %p1206_p13 = pnand %p1205_p12, %p1199_p11 }
 0x3af   : > { %1209 = shalt.err (!%p1206_p13)
}
 0x3b0   : > { %s1277_s23 = smov 256   ;;  %s1278_s14 = smov 16  }
 0x3b1   : > { %913 = dma.vmem_to_hbm [thread:$0]  (%p1700_p4), %s1628_s19, 1024, %s1626_s17, %s696_s8, %s1277_s23, %s1277_s23, %s1278_s14  }
 0x3b2 PF: > { %s724_s11 = sand.u32 1, %s1248_s26   ;;  %p1701_p1 = scmp.ne.s32.totalorder %s1691_s10, 0 }
 0x3b3   : > { %p1702_p3 = scmp.ge.s32.totalorder %s1260_s29, 2  ;;  %s725_s21 = scalar_lea.sflag [#allocation5], %s724_s11 }
 0x3b5   : > { %p936_p2 = pnand %p1702_p3, %p1701_p1 }
 0x3b7   : > { %1243 = dma.done.wait (!%p936_p2), %s725_s21, 1024  }
 0x3b8   : > { %1245 = vsyncadd (!%p936_p2), %s725_s21, 4294966272  ;;  %p24_p8 = scmp.ge.s32.totalorder %s1487_s20, 4   ;;  %s1703_s26 = smov %s1252_s27 }
 0x3b9   : > { %s1704_s27 = smov %s1256_s28  ;;  %s1705_s28 = smov %s1499_s22 }
 0x3ba   : > { %s1706_s29 = smov %s1487_s20  ;;  %26 = sbr.rel (!%p24_p8) target bundleno = 10 (0xa), region = 113 }
 0x3c1   :  { %730 = vsyncpa [#allocation4], 1 }
 0x3c2   :  { %732 = vsyncpa [#allocation4 + $0x1], 1 }
 0x3c3   :  { %733 = vsyncpa [#allocation7], 1 }
 0x3c4   :  { %734 = vsyncpa [#allocation10], 1 }
 0x3c5   :  { %735 = vsyncpa [#allocation13], 1 }
 0x3c6   :  { %736 = vsyncpa [#allocation5], 1 }
 0x3c7   :  { %738 = vsyncpa [#allocation5 + $0x1], 1 }

</bundles_post_ra>
